<compile_context>
chip_gen: v7x
topology: tpu7x:2x2x1
jax: 0.10.0
libtpu: 0.0.40
codegen_flags: <defaults>
</compile_context>

<pallas_src>
import functools

import jax
import jax.numpy as jnp
from jax.experimental import pallas as pl
from jax.experimental.pallas import tpu as pltpu


# ----------------------------- device-aware tiling ----------------------------

def _device_caps():
    """Per-generation tiling caps.  v7x has half the VMEM of v5e/v6e, so its
    tiles are re-derived against a smaller budget instead of copying a v6e
    config."""
    try:
        kind = jax.devices()[0].device_kind.lower()
    except Exception:
        kind = ""
    if "v7" in kind:
        return dict(tt_target=256, max_lanes=2048, vmem_cap=32 * 2**20)
    if "v5" in kind or "v6" in kind:
        return dict(tt_target=512, max_lanes=4096, vmem_cap=64 * 2**20)
    # Unknown / older chips: conservative defaults.
    return dict(tt_target=256, max_lanes=2048, vmem_cap=32 * 2**20)


def _vmem_estimate(tt, lu, E, UH, enc_bytes, out_bytes):
    return (2 * tt * E * enc_bytes       # enc tile, double-buffered
            + 2 * UH * 4                 # pd (full U*H, f32), double-buffered
            + 1 * E * lu * enc_bytes     # replicated W_e, single-buffered
            + 2 * tt * lu * out_bytes    # output tile, double-buffered
            + tt * lu * 4)               # pe f32 scratch


def _select_tiles(Tp, U, H, E, enc_bytes, out_bytes, *, tt_target, max_lanes,
                  vmem_cap):
    """Pick (TT, TU) = largest exact-divisor tiles that fit the VMEM budget."""
    tt_cands = [tt for tt in range(8, min(Tp, max(tt_target, 8)) + 1, 8)
                if Tp % tt == 0]
    if not tt_cands:
        # TODO(synk): pad Tp to a multiple of 8 (masked tail) instead of the
        # full-extent fallback on awkward time lengths.
        tt_cands = [Tp]
    tu_cands = [tu for tu in range(1, U + 1)
                if U % tu == 0 and (tu * H) % 128 == 0 and tu * H <= max_lanes]
    if not tu_cands:
        # TODO(synk): pad H up to a 128-friendly width instead of folding all
        # of U*H into a single (possibly huge) tile.
        tu_cands = [U]

    UH = U * H
    budget = int(vmem_cap * 0.9)          # headroom for Mosaic-internal scratch
    fitting, all_c = [], []
    for tt in tt_cands:
        for tu in tu_cands:
            lu = tu * H
            est = _vmem_estimate(tt, lu, E, UH, enc_bytes, out_bytes)
            all_c.append((est, tt, tu))
            if est <= budget:
                fitting.append((tt * lu, tt, tu, est))
    if fitting:
        _, TT, TU, est = max(fitting)      # biggest tile volume that fits
    else:
        est, TT, TU = min(all_c)           # smallest demand; may oversubscribe
    return TT, TU, est


def _pick_tanh_dtype(out_dtype):
    """bf16 tanh keeps the single EUP off the critical path on v6e/v7x; v5 and
    older have no bf16 EUP/VPU, so stay in f32 there."""
    if out_dtype != jnp.dtype(jnp.bfloat16):
        return jnp.dtype(jnp.float32)
    try:
        kind = jax.devices()[0].device_kind.lower()
    except Exception:
        return jnp.dtype(jnp.float32)
    if any(f"v{v}" in kind for v in (2, 3, 4, 5)):
        return jnp.dtype(jnp.float32)
    return jnp.dtype(jnp.bfloat16)


# --------------------------------- kernel --------------------------------------

def _concat_joint_kernel(enc_ref, pd_ref, we_ref, out_ref, pe_ref, *, lu,
                         tanh_dtype):
    """One grid step = (batch b, time-tile t, label-tile u); u is innermost.

    enc_ref: (1, TT, E)      encoder tile (bf16 by default, batch-first)
    pd_ref:  (1, 1, U*H)     dec @ W_d + bias for this batch row (f32, lane-flat)
    we_ref:  (E, TU*H)       W_e replicated TU times along lanes (constant)
    out_ref: (1, TT, TU*H)   lane-dense output tile (folded (U, H) axis)
    pe_ref:  (TT, TU*H) f32  scratch: enc_tile @ W_e_rep, reused across u tiles
    """
    u = pl.program_id(2)

    @pl.when(u == 0)
    def _():
        # pe_ref[t, j*H + h] == (enc_tile @ W_e)[t, h] for every j < TU, and it
        # is identical for every u tile of this (b, t) tile -> compute once.
        pe_ref[...] = jnp.dot(enc_ref[0], we_ref[...],
                              preferred_element_type=jnp.float32)

    # Slice this u-tile's precomputed decoder projection (bias already folded).
    off = pl.multiple_of(u * lu, 128)
    pd_row = pd_ref[0, :, pl.ds(off, lu)]                   # (1, LU) f32
    joint = pe_ref[...] + pd_row                            # (TT, LU) f32
    out_ref[0] = jnp.tanh(joint.astype(tanh_dtype)).astype(out_ref.dtype)


# --------------------------------- wrapper --------------------------------------

@functools.partial(
    jax.jit,
    static_argnames=("downsample", "padding_idx", "out_dtype", "tanh_dtype",
                     "mxu_dtype"))
def _forward_impl(encoder_state, encoder_padding_mask, decoder_state, w, b, *,
                  downsample, padding_idx, out_dtype, tanh_dtype, mxu_dtype):
    E = encoder_state.shape[-1]
    H = w.shape[0]
    B, U, _ = decoder_state.shape

    # --- cheap glue (XLA) -------------------------------------------------------
    # Cast to the MXU dtype *before* the slice+transpose so the enc relayout
    # round trip moves bf16 bytes; then go batch-first.
    # TODO(synk): for very small U*H the transpose round trip is the largest
    # remaining HBM cost; reading time-first enc directly in-kernel needs a
    # (TT, B, E) block + in-kernel batch select and is deliberately left out.
    enc_src = encoder_state if downsample == 1 else encoder_state[::downsample]
    enc = jnp.transpose(enc_src.astype(mxu_dtype), (1, 0, 2))      # (B, T', E)
    Tp = enc.shape[1]

    caps = _device_caps()
    enc_bytes = jnp.dtype(mxu_dtype).itemsize
    out_bytes = jnp.dtype(out_dtype).itemsize
    TT, TU, vmem_est = _select_tiles(Tp, U, H, E, enc_bytes, out_bytes, **caps)
    LU = TU * H
    nT, nU = Tp // TT, U // TU

    # Split fc1 weight for the virtual concat; pre-transpose to (in, out).
    w_enc = jnp.transpose(w[:, :E]).astype(mxu_dtype)               # (E, H)
    w_dec = jnp.transpose(w[:, E:])                                 # (D, H) f32
    # Replicate W_e along the folded lane axis so the MXU writes pe directly in
    # the (TT, TU*H) lane-dense layout (no in-kernel relayout).
    w_enc_rep = jnp.tile(w_enc, (1, TU))                            # (E, TU*H)

    # Decoder projection + bias: tiny -> plain XLA matmul, lane-flattened, f32.
    pd = jnp.einsum("bud,dh->buh", decoder_state, w_dec,
                    preferred_element_type=jnp.float32) + b.astype(jnp.float32)
    pd = pd.reshape(B, 1, U * H)                                    # (B,1,U*H) f32

    # Explicit VMEM limit derived from the budget (never below 16 MiB).
    vmem_limit = int(max(16 * 2**20, min(caps["vmem_cap"], int(vmem_est * 1.5))))
    if vmem_est > caps["vmem_cap"]:
        vmem_limit = int(vmem_est * 5 // 4)     # oversubscribed fallback shapes

    # Constant replicated weight: single-buffered (DMA'd once; halves its VMEM).
    we_idx = lambda bb, tt, uu: (0, 0)
    try:
        we_spec = pl.BlockSpec((E, LU), we_idx, pipeline_mode=pl.Buffered(1))
    except TypeError:   # older Pallas without pipeline_mode: default buffering
        we_spec = pl.BlockSpec((E, LU), we_idx)

    cost = pl.CostEstimate(
        flops=int(2 * B * Tp * E * LU + B * Tp * U * H),
        transcendentals=int(B * Tp * U * H),
        bytes_accessed=int(B * Tp * U * H * out_bytes + B * Tp * E * enc_bytes
                           + B * U * H * 4 + E * LU * enc_bytes),
    )

    kernel = functools.partial(_concat_joint_kernel, lu=LU, tanh_dtype=tanh_dtype)

    out_flat = pl.pallas_call(
        kernel,
        out_shape=jax.ShapeDtypeStruct((B, Tp, U * H), out_dtype),
        grid_spec=pltpu.PrefetchScalarGridSpec(
            num_scalar_prefetch=0,
            grid=(B, nT, nU),                      # u innermost: pe scratch reuse
            in_specs=[
                pl.BlockSpec((1, TT, E), lambda bb, tt, uu: (bb, tt, 0)),
                pl.BlockSpec((1, 1, U * H), lambda bb, tt, uu: (bb, 0, 0)),
                we_spec,
            ],
            out_specs=pl.BlockSpec((1, TT, LU), lambda bb, tt, uu: (bb, tt, uu)),
            scratch_shapes=[pltpu.VMEM((TT, LU), jnp.float32)],
        ),
        compiler_params=pltpu.CompilerParams(
            # TODO(synk): on v7x, if profiling shows one idle TensorCore, mark
            # the leading axis pltpu.CORE_PARALLEL (needs B*nT >= 2, even split).
            dimension_semantics=("parallel", "parallel", "arbitrary"),
            vmem_limit_bytes=vmem_limit),
        cost_estimate=cost,
    )(enc, pd, w_enc_rep)

    # Free (contiguous last-dim split) un-fold back to (B, T', U, H).
    h_joint = out_flat.reshape(B, Tp, U, H)

    # fake_src_lengths bookkeeping (tiny scalar path; kept in plain JAX).
    lengths = jnp.sum(encoder_padding_mask.astype(jnp.int32) != padding_idx,
                      axis=-1).astype(jnp.int32)
    lengths = (lengths + downsample - 1) // downsample      # ceil for ints >= 0
    return h_joint, lengths


def concat_joint_net_forward(encoder_state, encoder_padding_mask, decoder_state,
                             w, b, *, downsample=1, padding_idx=1,
                             out_dtype=jnp.bfloat16, mxu_dtype=jnp.bfloat16):
    """encoder_state: (T, B, E) time-first (fairseq layout).
       encoder_padding_mask: (B, T) bool.  decoder_state: (B, U, D).
       w: (H, E+D) like nn.Linear.weight, b: (H,).
       Returns (h_joint (B, T', U, H) in out_dtype, fake_src_lengths (B,)).
       Pass out_dtype=mxu_dtype=float32 for strict f32 parity with PyTorch."""
    out_dtype = jnp.dtype(out_dtype)
    mxu_dtype = jnp.dtype(mxu_dtype)
    tanh_dtype = _pick_tanh_dtype(out_dtype)
    return _forward_impl(encoder_state, encoder_padding_mask, decoder_state, w, b,
                         downsample=downsample, padding_idx=padding_idx,
                         out_dtype=out_dtype, tanh_dtype=tanh_dtype,
                         mxu_dtype=mxu_dtype)


# ------------------------------ pure-JAX reference ------------------------------

def _reference_forward(encoder_state, encoder_padding_mask, decoder_state,
                       w, b, downsample, padding_idx):
    """Pure-JAX mirror of the PyTorch forward (concat then Linear then tanh)."""
    enc = encoder_state[::downsample]
    enc = jnp.transpose(enc, (1, 0, 2))                    # (B, T', E)
    B, T, _ = enc.shape
    U = decoder_state.shape[1]
    enc_e = jnp.broadcast_to(enc[:, :, None, :], (B, T, U, enc.shape[-1]))
    dec_e = jnp.broadcast_to(decoder_state[:, None, :, :],
                             (B, T, U, decoder_state.shape[-1]))
    h = jnp.concatenate([enc_e, dec_e], axis=-1)
    h = jnp.tanh(jnp.einsum("btuc,hc->btuh", h, w) + b)
    lengths = jnp.sum(encoder_padding_mask.astype(jnp.int32) != padding_idx, axis=-1)
    lengths = jnp.ceil(lengths / downsample).astype(jnp.int32)
    return h, lengths


# ------------------------------------ main --------------------------------------

if __name__ == "__main__":
    B, T_enc, U = 2, 16, 8
    encoder_dim, decoder_dim, hid_dim = 32, 32, 32
    downsample, padding_idx = 2, 1

    key = jax.random.PRNGKey(0)
    k1, k2, k3, k4, k5 = jax.random.split(key, 5)

    encoder_state = jax.random.normal(k1, (T_enc, B, encoder_dim), jnp.float32)
    decoder_state = jax.random.normal(k2, (B, U, decoder_dim), jnp.float32)
    encoder_padding_mask = jax.random.bernoulli(k3, 0.25, (B, T_enc))

    fan_in = encoder_dim + decoder_dim
    bound = 1.0 / jnp.sqrt(fan_in)
    w = jax.random.uniform(k4, (hid_dim, fan_in), jnp.float32, -bound, bound)
    b = jax.random.uniform(k5, (hid_dim,), jnp.float32, -bound, bound)

    h_ref, len_ref = _reference_forward(encoder_state, encoder_padding_mask,
                                        decoder_state, w, b, downsample, padding_idx)

    # 1) Strict f32 parity path (f32 MXU operands + f32 output): tight check.
    h32, len32 = concat_joint_net_forward(
        encoder_state, encoder_padding_mask, decoder_state, w, b,
        downsample=downsample, padding_idx=padding_idx,
        out_dtype=jnp.float32, mxu_dtype=jnp.float32)
    jax.block_until_ready((h32, len32))
    assert h32.shape == (B, T_enc // downsample, U, hid_dim), h32.shape
    assert jnp.allclose(h32, h_ref, atol=2e-3, rtol=2e-3)
    assert jnp.array_equal(len32, len_ref)

    # 2) Default bf16 path (bf16 MXU operands + bf16 writeback): loose check.
    hbf, lenbf = concat_joint_net_forward(
        encoder_state, encoder_padding_mask, decoder_state, w, b,
        downsample=downsample, padding_idx=padding_idx)
    jax.block_until_ready((hbf, lenbf))
    assert hbf.dtype == jnp.bfloat16
    assert hbf.shape == (B, T_enc // downsample, U, hid_dim), hbf.shape
    assert jnp.allclose(hbf.astype(jnp.float32), h_ref, atol=3e-2, rtol=3e-2)
    assert jnp.array_equal(lenbf, len_ref)

    print("KERNEL_OK")
</pallas_src>

<mosaic_0001>
module attributes {stable_mosaic.version = 11 : i64} {
  func.func @_concat_joint_kernel(%arg0: i32, %arg1: i32, %arg2: i32, %arg3: memref<1x8x32xf32, #tpu.memory_space<vmem>>, %arg4: memref<1x1x256xf32, #tpu.memory_space<vmem>>, %arg5: memref<32x256xf32, #tpu.memory_space<vmem>>, %arg6: memref<1x8x256xf32, #tpu.memory_space<vmem>>, %arg7: memref<8x256xf32, #tpu.memory_space<vmem>>) attributes {dimension_semantics = [#tpu.dimension_semantics<parallel>, #tpu.dimension_semantics<parallel>, #tpu.dimension_semantics<arbitrary>], iteration_bounds = array<i64: 2, 1, 1>, scalar_prefetch = 0 : i64, scratch_operands = 1 : i64, tpu.core_type = #tpu.core_type<tc>, window_params = [{transform_indices = @transform_0, window_bounds = array<i64: 1, 8, 32>}, {transform_indices = @transform_1, window_bounds = array<i64: 1, 1, 256>}, {pipeline_mode = #tpu.pipeline_mode<synchronous>, transform_indices = @transform_2, window_bounds = array<i64: 32, 256>}, {transform_indices = @transform_3, window_bounds = array<i64: 1, 8, 256>}]} {
    %c0_i32 = arith.constant 0 : i32
    %0 = arith.cmpi eq, %arg2, %c0_i32 : i32
    %1 = arith.extui %0 : i1 to i32
    %c0_i32_0 = arith.constant 0 : i32
    %2 = arith.cmpi ne, %1, %c0_i32_0 : i32
    scf.if %2 {
      %c0_7 = arith.constant 0 : index
      %c0_8 = arith.constant 0 : index
      %c0_9 = arith.constant 0 : index
      %15 = vector.load %arg3[%c0_7, %c0_8, %c0_9] : memref<1x8x32xf32, #tpu.memory_space<vmem>>, vector<1x8x32xf32>
      %16 = vector.shape_cast %15 : vector<1x8x32xf32> to vector<8x32xf32>
      %c0_10 = arith.constant 0 : index
      %c0_11 = arith.constant 0 : index
      %17 = vector.load %arg5[%c0_10, %c0_11] : memref<32x256xf32, #tpu.memory_space<vmem>>, vector<32x256xf32>
      %cst = arith.constant dense<0.000000e+00> : vector<8x256xf32>
      %18 = tpu.matmul %16, %17, %cst {dimension_numbers = #tpu.dot_dimension_numbers<[1], [0], [0], [1], [0, 0, 1, 1], [], []>} : vector<8x32xf32>, vector<32x256xf32>, vector<8x256xf32> -> vector<8x256xf32>
      %c0_12 = arith.constant 0 : index
      %c0_13 = arith.constant 0 : index
      %19 = vector.load %arg7[%c0_12, %c0_13] : memref<8x256xf32, #tpu.memory_space<vmem>>, vector<8x256xf32>
      tpu.vector_store %arg7[%c0_12, %c0_13], %18 {strides = array<i32>} : memref<8x256xf32, #tpu.memory_space<vmem>>, vector<8x256xf32>,
    } else {
    }
    %c256_i32 = arith.constant 256 : i32
    %3 = arith.muli %arg2, %c256_i32 : i32
    %4 = tpu.assume_multiple %3, 128 : i32
    %c0 = arith.constant 0 : index
    %c0_1 = arith.constant 0 : index
    %5 = arith.index_cast %4 : i32 to index
    %6 = vector.load %arg4[%c0, %c0_1, %5] : memref<1x1x256xf32, #tpu.memory_space<vmem>>, vector<1x1x256xf32>
    %7 = vector.shape_cast %6 : vector<1x1x256xf32> to vector<1x256xf32>
    %c0_2 = arith.constant 0 : index
    %c0_3 = arith.constant 0 : index
    %8 = vector.load %arg7[%c0_2, %c0_3] : memref<8x256xf32, #tpu.memory_space<vmem>>, vector<8x256xf32>
    %9 = vector.broadcast %7 : vector<1x256xf32> to vector<8x256xf32>
    %10 = arith.addf %8, %9 : vector<8x256xf32>
    %11 = math.tanh %10 : vector<8x256xf32>
    %c0_4 = arith.constant 0 : index
    %c0_5 = arith.constant 0 : index
    %c0_6 = arith.constant 0 : index
    %12 = vector.load %arg6[%c0_4, %c0_5, %c0_6] : memref<1x8x256xf32, #tpu.memory_space<vmem>>, vector<1x8x256xf32>
    %13 = vector.shape_cast %12 : vector<1x8x256xf32> to vector<8x256xf32>
    %14 = vector.shape_cast %11 : vector<8x256xf32> to vector<1x8x256xf32>
    tpu.vector_store %arg6[%c0_4, %c0_5, %c0_6], %14 {strides = array<i32>} : memref<1x8x256xf32, #tpu.memory_space<vmem>>, vector<1x8x256xf32>,
    return
  }
  func.func @transform_0(%arg0: i32, %arg1: i32, %arg2: i32) -> (i32, i32, i32) {
    %c0_i32 = arith.constant 0 : i32
    %c0_i32_0 = arith.constant 0 : i32
    return %arg0, %arg1, %c0_i32 : i32, i32, i32
  }
  func.func @transform_1(%arg0: i32, %arg1: i32, %arg2: i32) -> (i32, i32, i32) {
    %c0_i32 = arith.constant 0 : i32
    %c0_i32_0 = arith.constant 0 : i32
    %c0_i32_1 = arith.constant 0 : i32
    return %arg0, %c0_i32, %c0_i32_0 : i32, i32, i32
  }
  func.func @transform_2(%arg0: i32, %arg1: i32, %arg2: i32) -> (i32, i32) {
    %c0_i32 = arith.constant 0 : i32
    %c0_i32_0 = arith.constant 0 : i32
    %c0_i32_1 = arith.constant 0 : i32
    return %c0_i32, %c0_i32_0 : i32, i32
  }
  func.func @transform_3(%arg0: i32, %arg1: i32, %arg2: i32) -> (i32, i32, i32) {
    %c0_i32 = arith.constant 0 : i32
    return %arg0, %arg1, %arg2 : i32, i32, i32
  }
}

</mosaic_0001>

<bundles_post_ra>
// kernel: tile.9
= control target key start
LH: loop header
LB: loop body
LE: loop exit
PB: predicated region body
PF: predicated region fallthrough
CT: control target
= control target key end

     0   :  { %vm92_vm0 = vcmask 1047556   ;;  %s459_s14 = smov 96   ;;  %s460_s26 = smov 64   ;;  %vm3_vm1 = vcmask 261120   ;;  %vm96_vm2 = vcmask 1048320   ;;  %vm183_vm3 = vcmask 785920   ;;  %s904_s0 = inlined_call_operand.vmem [shape: f32[32,8,32], index: 0, kind: input, shape index: {}]   ;;  %s905_s1 = inlined_call_operand.vmem [shape: f32[32,256], index: 1, kind: output, shape index: {}]  }
   0x1   :  { %v392_v0 = vld [vmem:[%s904_s0 + $0x7] ss:$8 sm:$0xf]   ;;  %v387_v3 = vld [vmem:[%s904_s0 + $0x3] ss:$8 sm:$0xf]  }
   0x2   :  { %v393_v1 = vld [vmem:[%s904_s0 + $0x7] ss:$8 sm:$0xf0]   ;;  %v388_v4 = vld [vmem:[%s904_s0 + $0x3] ss:$8 sm:$0xf0]  }
   0x3   :  { %v114_v2 = vsel %vm92_vm0, %v393_v1, %v392_v0  ;;  %v93_v5 = vsel %vm92_vm0, %v388_v4, %v387_v3  ;;  %v395_v6 = vld [vmem:[%s904_s0 + $0x87] ss:$8 sm:$0xf]   ;;  %v389_v9 = vld [vmem:[%s904_s0 + $0x83] ss:$8 sm:$0xf]  }
   0x4   :  { %115 = vrot.lane.b32.xlu1 %v114_v2, %s459_s14  ;;  %v396_v7 = vld [vmem:[%s904_s0 + $0x87] ss:$8 sm:$0xf0]   ;;  %94 = vrot.lane.b32.xlu0 %v93_v5, %s459_s14  ;;  %v390_v10 = vld [vmem:[%s904_s0 + $0x83] ss:$8 sm:$0xf0]  }
   0x5   :  { %v125_v8 = vsel %vm92_vm0, %v396_v7, %v395_v6  ;;  %v103_v11 = vsel %vm92_vm0, %v390_v10, %v389_v9  ;;  %v401_v12 = vld [vmem:[%s904_s0 + $0xc3] ss:$8 sm:$0xf]   ;;  %v407_v18 = vld [vmem:[%s904_s0 + $0xc7] ss:$8 sm:$0xf]  }
   0x6   :  { %v402_v13 = vld [vmem:[%s904_s0 + $0xc3] ss:$8 sm:$0xf0]   ;;  %v408_v19 = vld [vmem:[%s904_s0 + $0xc7] ss:$8 sm:$0xf0]  }
   0x7   :  { %v398_v14 = vld [vmem:[%s904_s0 + $0x43] ss:$8 sm:$0xf]   ;;  %v147_v16 = vsel %vm92_vm0, %v402_v13, %v401_v12  ;;  %v404_v20 = vld [vmem:[%s904_s0 + $0x47] ss:$8 sm:$0xf]   ;;  %v169_v22 = vsel %vm92_vm0, %v408_v19, %v407_v18 }
   0x8   :  { %v399_v15 = vld [vmem:[%s904_s0 + $0x43] ss:$8 sm:$0xf0]   ;;  %126 = vrot.lane.b32.xlu1 %v125_v8, %s459_s14  ;;  %104 = vrot.lane.b32.xlu0 %v103_v11, %s459_s14  ;;  %v405_v21 = vld [vmem:[%s904_s0 + $0x47] ss:$8 sm:$0xf0]  }
   0x9   :  { %v136_v17 = vsel %vm92_vm0, %v399_v15, %v398_v14  ;;  %v158_v23 = vsel %vm92_vm0, %v405_v21, %v404_v20  ;;  %v412_v24 = vld [vmem:[%s904_s0 + $0x82] ss:$8 sm:$0xf]   ;;  %v418_v30 = vld [vmem:[%s904_s0 + $0x86] ss:$8 sm:$0xf]  }
   0xa   :  { %v413_v25 = vld [vmem:[%s904_s0 + $0x82] ss:$8 sm:$0xf0]   ;;  %v419_v31 = vld [vmem:[%s904_s0 + $0x86] ss:$8 sm:$0xf0]  }
   0xb   :  { %v410_v26 = vld [vmem:[%s904_s0 + $0x2] ss:$8 sm:$0xf]   ;;  %v190_v28 = vsel %vm92_vm0, %v413_v25, %v412_v24  ;;  %v415_v32 = vld [vmem:[%s904_s0 + $0x6] ss:$8 sm:$0xf]   ;;  %v212_v34 = vsel %vm92_vm0, %v419_v31, %v418_v30 }
   0xc   :  { %148 = vrot.lane.b32.xlu1 %v147_v16, %s459_s14  ;;  %137 = vrot.lane.b32.xlu0 %v136_v17, %s459_s14  ;;  %v411_v27 = vld [vmem:[%s904_s0 + $0x2] ss:$8 sm:$0xf0]   ;;  %v416_v33 = vld [vmem:[%s904_s0 + $0x6] ss:$8 sm:$0xf0]  }
   0xd   :  { %v180_v29 = vsel %vm92_vm0, %v411_v27, %v410_v26  ;;  %v201_v35 = vsel %vm92_vm0, %v416_v33, %v415_v32  ;;  %v424_v36 = vld [vmem:[%s904_s0 + $0xc2] ss:$8 sm:$0xf]   ;;  %v430_v40 = vld [vmem:[%s904_s0 + $0xc6] ss:$8 sm:$0xf]  }
   0xe   :  { %v425_v37 = vld [vmem:[%s904_s0 + $0xc2] ss:$8 sm:$0xf0]   ;;  %v431_v42 = vld [vmem:[%s904_s0 + $0xc6] ss:$8 sm:$0xf0]  }
   0xf   :  { %v421_v38 = vld [vmem:[%s904_s0 + $0x42] ss:$8 sm:$0xf]   ;;  %v234_v41 = vsel %vm92_vm0, %v425_v37, %v424_v36  ;;  %v427_v43 = vld [vmem:[%s904_s0 + $0x46] ss:$8 sm:$0xf]   ;;  %v256_v53 = vsel %vm92_vm0, %v431_v42, %v430_v40 }
  0x10   :  { %170 = vrot.lane.b32.xlu1 %v169_v22, %s459_s14  ;;  %159 = vrot.lane.b32.xlu0 %v158_v23, %s459_s14  ;;  %v422_v39 = vld [vmem:[%s904_s0 + $0x42] ss:$8 sm:$0xf0]   ;;  %v428_v45 = vld [vmem:[%s904_s0 + $0x46] ss:$8 sm:$0xf0]  }
  0x11   :  { %v223_v44 = vsel %vm92_vm0, %v422_v39, %v421_v38  ;;  %v367_v46 = vld [vmem:[%s904_s0 + $0x80] ss:$4 sm:$0xff]   ;;  %v245_v55 = vsel %vm92_vm0, %v428_v45, %v427_v43  ;;  %v435_v56 = vld [vmem:[%s904_s0 + $0x81] ss:$8 sm:$0xf]   ;;  %s461_s25 = smov 32  }
  0x12   :  { %368 = vst.msk [vmem:[%s905_s1 + $0x20] ss:$8 sm:$0x3] %vm3_vm1, %v367_v46   ;;  %369 = vst.msk [vmem:[%s905_s1 + $0x11] ss:$8 sm:$0xc] %vm3_vm1, %v367_v46  }
  0x13   :  { %370 = vst.msk [vmem:[%s905_s1 + $0x2] ss:$8 sm:$0x30] %vm3_vm1, %v367_v46   ;;  %371 = vst.msk [vmem:[%s905_s1 - $0xd] ss:$8 sm:$0xc0] %vm3_vm1, %v367_v46  }
  0x14   :  { %191 = vrot.lane.b32.xlu1 %v190_v28, %s460_s26  ;;  %181 = vrot.lane.b32.xlu0 %v180_v29, %s460_s26  ;;  %v372_v47 = vld [vmem:[%s904_s0 + $0xa0] ss:$4 sm:$0xff]   ;;  %v436_v57 = vld [vmem:[%s904_s0 + $0x81] ss:$8 sm:$0xf0]   ;;  %vm270_vm4 = vcmask 523520  }
  0x15   :  { %v2_v48 = vld [vmem:[%s904_s0] ss:$4 sm:$0xff]   ;;  %373 = vst.msk [vmem:[%s905_s1 + $0x24] ss:$8 sm:$0x3] %vm3_vm1, %v372_v47   ;;  %v277_v60 = vsel %vm92_vm0, %v436_v57, %v435_v56 }
  0x16   :  { %v352_v49 = vld [vmem:[%s904_s0 + $0x20] ss:$4 sm:$0xff]   ;;  %374 = vst.msk [vmem:[%s905_s1 + $0x15] ss:$8 sm:$0xc] %vm3_vm1, %v372_v47  }
  0x17   :  { %375 = vst.msk [vmem:[%s905_s1 + $0x6] ss:$8 sm:$0x30] %vm3_vm1, %v372_v47   ;;  %376 = vst.msk [vmem:[%s905_s1 - $0x9] ss:$8 sm:$0xc0] %vm3_vm1, %v372_v47  }
  0x18   :  { %213 = vrot.lane.b32.xlu1 %v212_v34, %s460_s26  ;;  %202 = vrot.lane.b32.xlu0 %v201_v35, %s460_s26  ;;  %4 = vst.msk [vmem:[%s905_s1] ss:$8 sm:$0x3] %vm3_vm1, %v2_v48   ;;  %349 = vst.msk [vmem:[%s905_s1 - $0xf] ss:$8 sm:$0xc] %vm3_vm1, %v2_v48  }
  0x19   :  { %350 = vst.msk [vmem:[%s905_s1 - $0x1e] ss:$8 sm:$0x30] %vm3_vm1, %v2_v48   ;;  %351 = vst.msk [vmem:[%s905_s1 - $0x2d] ss:$8 sm:$0xc0] %vm3_vm1, %v2_v48  }
  0x1a   :  { %353 = vst.msk [vmem:[%s905_s1 + $0x4] ss:$8 sm:$0x3] %vm3_vm1, %v352_v49   ;;  %354 = vst.msk [vmem:[%s905_s1 - $0xb] ss:$8 sm:$0xc] %vm3_vm1, %v352_v49  }
  0x1b   :  { %355 = vst.msk [vmem:[%s905_s1 - $0x1a] ss:$8 sm:$0x30] %vm3_vm1, %v352_v49   ;;  %356 = vst.msk [vmem:[%s905_s1 - $0x29] ss:$8 sm:$0xc0] %vm3_vm1, %v352_v49  }
  0x1c   :  { %235 = vrot.lane.b32.xlu1 %v234_v41, %s460_s26  ;;  %v377_v50 = vld [vmem:[%s904_s0 + $0xc0] ss:$4 sm:$0xff]   ;;  %224 = vrot.lane.b32.xlu0 %v223_v44, %s460_s26  ;;  %v433_v58 = vld [vmem:[%s904_s0 + $0x1] ss:$8 sm:$0xf]  }
  0x1d   :  { %v382_v51 = vld [vmem:[%s904_s0 + $0xe0] ss:$4 sm:$0xff]   ;;  %378 = vst.msk [vmem:[%s905_s1 + $0x30] ss:$8 sm:$0x3] %vm3_vm1, %v377_v50  }
  0x1e   :  { %v357_v52 = vld [vmem:[%s904_s0 + $0x40] ss:$4 sm:$0xff]   ;;  %379 = vst.msk [vmem:[%s905_s1 + $0x21] ss:$8 sm:$0xc] %vm3_vm1, %v377_v50  }
  0x1f   :  { %380 = vst.msk [vmem:[%s905_s1 + $0x12] ss:$8 sm:$0x30] %vm3_vm1, %v377_v50   ;;  %381 = vst.msk [vmem:[%s905_s1 + $0x3] ss:$8 sm:$0xc0] %vm3_vm1, %v377_v50  }
  0x20   :  { %383 = vst.msk [vmem:[%s905_s1 + $0x34] ss:$8 sm:$0x3] %vm3_vm1, %v382_v51   ;;  %384 = vst.msk [vmem:[%s905_s1 + $0x25] ss:$8 sm:$0xc] %vm3_vm1, %v382_v51   ;;  %257 = vrot.lane.b32.xlu1 %v256_v53, %s460_s26  ;;  %246 = vrot.lane.b32.xlu0 %v245_v55, %s460_s26 }
  0x21   :  { %385 = vst.msk [vmem:[%s905_s1 + $0x16] ss:$8 sm:$0x30] %vm3_vm1, %v382_v51   ;;  %386 = vst.msk [vmem:[%s905_s1 + $0x7] ss:$8 sm:$0xc0] %vm3_vm1, %v382_v51  }
  0x22   :  { %358 = vst.msk [vmem:[%s905_s1 + $0x10] ss:$8 sm:$0x3] %vm3_vm1, %v357_v52   ;;  %359 = vst.msk [vmem:[%s905_s1 + $0x1] ss:$8 sm:$0xc] %vm3_vm1, %v357_v52  }
  0x23   :  { %360 = vst.msk [vmem:[%s905_s1 - $0xe] ss:$8 sm:$0x30] %vm3_vm1, %v357_v52   ;;  %361 = vst.msk [vmem:[%s905_s1 - $0x1d] ss:$8 sm:$0xc0] %vm3_vm1, %v357_v52  }
  0x24   :  { %v362_v54 = vld [vmem:[%s904_s0 + $0x60] ss:$4 sm:$0xff]   ;;  %v434_v59 = vld [vmem:[%s904_s0 + $0x1] ss:$8 sm:$0xf0]   ;;  %278 = vrot.lane.b32.xlu1 %v277_v60, %s461_s25 }
  0x25   :  { %363 = vst.msk [vmem:[%s905_s1 + $0x14] ss:$8 sm:$0x3] %vm3_vm1, %v362_v54   ;;  %364 = vst.msk [vmem:[%s905_s1 + $0x5] ss:$8 sm:$0xc] %vm3_vm1, %v362_v54   ;;  %v267_v61 = vsel %vm92_vm0, %v434_v59, %v433_v58 }
  0x26   :  { %365 = vst.msk [vmem:[%s905_s1 - $0xa] ss:$8 sm:$0x30] %vm3_vm1, %v362_v54   ;;  %366 = vst.msk [vmem:[%s905_s1 - $0x19] ss:$8 sm:$0xc0] %vm3_vm1, %v362_v54   ;;  %268 = vrot.lane.b32.xlu0 %v267_v61, %s461_s25 }
  0x27   :  { %v441_v62 = vld [vmem:[%s904_s0 + $0x85] ss:$8 sm:$0xf]   ;;  %v447_v4 = vld [vmem:[%s904_s0 + $0xc1] ss:$8 sm:$0xf]  }
  0x28   :  { %v442_v63 = vld [vmem:[%s904_s0 + $0x85] ss:$8 sm:$0xf0]   ;;  %v448_v5 = vld [vmem:[%s904_s0 + $0xc1] ss:$8 sm:$0xf0]  }
  0x29   :  { %v438_v0 = vld [vmem:[%s904_s0 + $0x5] ss:$8 sm:$0xf]   ;;  %v299_v2 = vsel %vm92_vm0, %v442_v63, %v441_v62  ;;  %v444_v6 = vld [vmem:[%s904_s0 + $0x41] ss:$8 sm:$0xf]   ;;  %v321_v8 = vsel %vm92_vm0, %v448_v5, %v447_v4 }
  0x2a   :  { %v439_v1 = vld [vmem:[%s904_s0 + $0x5] ss:$8 sm:$0xf0]   ;;  %v445_v7 = vld [vmem:[%s904_s0 + $0x41] ss:$8 sm:$0xf0]   ;;  %300 = vrot.lane.b32.xlu1 %v299_v2, %s461_s25 }
  0x2b   :  { %v288_v3 = vsel %vm92_vm0, %v439_v1, %v438_v0  ;;  %v310_v9 = vsel %vm92_vm0, %v445_v7, %v444_v6  ;;  %v453_v10 = vld [vmem:[%s904_s0 + $0xc5] ss:$8 sm:$0xf]  }
  0x2c   :  { %289 = vrot.lane.b32.xlu0 %v288_v3, %s461_s25  ;;  %v454_v11 = vld [vmem:[%s904_s0 + $0xc5] ss:$8 sm:$0xf0]  }
  0x2d   :  { %v450_v12 = vld [vmem:[%s904_s0 + $0x45] ss:$8 sm:$0xf]   ;;  %v343_v14 = vsel %vm92_vm0, %v454_v11, %v453_v10 }
  0x2e   :  { %v451_v13 = vld [vmem:[%s904_s0 + $0x45] ss:$8 sm:$0xf0]   ;;  %322 = vrot.lane.b32.xlu1 %v321_v8, %s461_s25 }
  0x2f   :  { %v332_v15 = vsel %vm92_vm0, %v451_v13, %v450_v12 }
  0x30   :  { %311 = vrot.lane.b32.xlu0 %v310_v9, %s461_s25 }
  0x32   :  { %344 = vrot.lane.b32.xlu1 %v343_v14, %s461_s25 }
  0x34   :  { %333 = vrot.lane.b32.xlu0 %v332_v15, %s461_s25 }
  0x76   :  { %v116_v16 = vpop.permute.xlu1 %115   ;;  %v95_v17 = vpop.permute.xlu0 %94  }
  0x77   :  { %394 = vst.msk [vmem:[%s905_s1 + $0x8] sm:$0xff] %vm96_vm2, %v116_v16   ;;  %97 = vst.msk [vmem:[%s905_s1] sm:$0xff] %vm96_vm2, %v95_v17  }
  0x7a   :  { %v127_v18 = vpop.permute.xlu1 %126   ;;  %v105_v19 = vpop.permute.xlu0 %104  }
  0x7b   :  { %397 = vst.msk [vmem:[%s905_s1 + $0x28] sm:$0xff] %vm96_vm2, %v127_v18   ;;  %391 = vst.msk [vmem:[%s905_s1 + $0x20] sm:$0xff] %vm96_vm2, %v105_v19  }
  0x7e   :  { %v149_v20 = vpop.permute.xlu1 %148   ;;  %v138_v21 = vpop.permute.xlu0 %137  }
  0x7f   :  { %403 = vst.msk [vmem:[%s905_s1 + $0x30] sm:$0xff] %vm96_vm2, %v149_v20   ;;  %400 = vst.msk [vmem:[%s905_s1 + $0x10] sm:$0xff] %vm96_vm2, %v138_v21  }
  0x82   :  { %v171_v22 = vpop.permute.xlu1 %170   ;;  %v160_v23 = vpop.permute.xlu0 %159  }
  0x83   :  { %409 = vst.msk [vmem:[%s905_s1 + $0x38] sm:$0xff] %vm96_vm2, %v171_v22   ;;  %406 = vst.msk [vmem:[%s905_s1 + $0x18] sm:$0xff] %vm96_vm2, %v160_v23  }
  0x86   :  { %v192_v24 = vpop.permute.xlu1 %191   ;;  %v182_v25 = vpop.permute.xlu0 %181  }
  0x87   :  { %414 = vst.msk [vmem:[%s905_s1 + $0x20] sm:$0xff] %vm183_vm3, %v192_v24   ;;  %184 = vst.msk [vmem:[%s905_s1] sm:$0xff] %vm183_vm3, %v182_v25  }
  0x8a   :  { %v214_v26 = vpop.permute.xlu1 %213   ;;  %v203_v27 = vpop.permute.xlu0 %202  }
  0x8b   :  { %420 = vst.msk [vmem:[%s905_s1 + $0x28] sm:$0xff] %vm183_vm3, %v214_v26   ;;  %417 = vst.msk [vmem:[%s905_s1 + $0x8] sm:$0xff] %vm183_vm3, %v203_v27  }
  0x8e   :  { %v236_v28 = vpop.permute.xlu1 %235   ;;  %v225_v29 = vpop.permute.xlu0 %224  }
  0x8f   :  { %426 = vst.msk [vmem:[%s905_s1 + $0x30] sm:$0xff] %vm183_vm3, %v236_v28   ;;  %423 = vst.msk [vmem:[%s905_s1 + $0x10] sm:$0xff] %vm183_vm3, %v225_v29  }
  0x92   :  { %v258_v30 = vpop.permute.xlu1 %257   ;;  %v247_v31 = vpop.permute.xlu0 %246  }
  0x93   :  { %432 = vst.msk [vmem:[%s905_s1 + $0x38] sm:$0xff] %vm183_vm3, %v258_v30   ;;  %429 = vst.msk [vmem:[%s905_s1 + $0x18] sm:$0xff] %vm183_vm3, %v247_v31  }
  0x96   :  { %v279_v32 = vpop.permute.xlu1 %278  }
  0x97   :  { %437 = vst.msk [vmem:[%s905_s1 + $0x20] sm:$0xff] %vm270_vm4, %v279_v32  }
  0x98   :  { %v269_v33 = vpop.permute.xlu0 %268  }
  0x99   :  { %271 = vst.msk [vmem:[%s905_s1] sm:$0xff] %vm270_vm4, %v269_v33  }
  0x9c   :  { %v301_v34 = vpop.permute.xlu1 %300  }
  0x9d   :  { %443 = vst.msk [vmem:[%s905_s1 + $0x28] sm:$0xff] %vm270_vm4, %v301_v34  }
  0x9e   :  { %v290_v35 = vpop.permute.xlu0 %289  }
  0x9f   :  { %440 = vst.msk [vmem:[%s905_s1 + $0x8] sm:$0xff] %vm270_vm4, %v290_v35  }
  0xa0   :  { %v323_v36 = vpop.permute.xlu1 %322  }
  0xa1   :  { %449 = vst.msk [vmem:[%s905_s1 + $0x30] sm:$0xff] %vm270_vm4, %v323_v36  }
  0xa2   :  { %v312_v37 = vpop.permute.xlu0 %311  }
  0xa3   :  { %446 = vst.msk [vmem:[%s905_s1 + $0x10] sm:$0xff] %vm270_vm4, %v312_v37  }
  0xa4   :  { %v345_v38 = vpop.permute.xlu1 %344  }
  0xa5   :  { %455 = vst.msk [vmem:[%s905_s1 + $0x38] sm:$0xff] %vm270_vm4, %v345_v38  }
  0xa6   :  { %v334_v39 = vpop.permute.xlu0 %333  }
  0xa7   :  { %452 = vst.msk [vmem:[%s905_s1 + $0x18] sm:$0xff] %vm270_vm4, %v334_v39  }

// kernel: _forward_impl.1
= control target key start
LH: loop header
LB: loop body
LE: loop exit
PB: predicated region body
PF: predicated region fallthrough
CT: control target
= control target key end

     0   :  { %s561_s12 = smov 0   ;;  %s563_s13 = smov 0   ;;  %s621_s0 = inlined_call_operand.vmem [shape: f32[2,8,32], index: 0, kind: input, shape index: {}]   ;;  %s622_s1 = inlined_call_operand.vmem [shape: f32[2,1,256], index: 1, kind: input, shape index: {}]   ;;  %s623_s2 = inlined_call_operand.vmem [shape: f32[32,256], index: 2, kind: input, shape index: {}]   ;;  %s624_s3 = inlined_call_operand.vmem [shape: f32[2,8,256], index: 3, kind: output, shape index: {}]  }
   0x1   :  { %s565_s14 = smov 0  }
   0x2 LB: > { %s32_s15 = sadd.s32 1, %s534_s13  ;;  %p470_p0 = scmp.ge.s32.totalorder %s538_s14, 1  ;;  %s538_s14 = sphi %s565_s14, %s13_s14   ;;  %s534_s13 = sphi %s563_s13, %s626_s13   ;;  %s530_s12 = sphi %s561_s12, %s625_s12  }
   0x3   : > { %p34_p1 = scmp.ge.s32.totalorder %s32_s15, 2  ;;  %p173_p2 = scmp.lt.s32.totalorder %s538_s14, 3 }
   0x5   : > { %s628_s15 = smov (%p34_p1, %s32_s15), 0  ;;  %p174_p3 = pnand %p470_p0, %p173_p2 }
   0x6   : > { %v242_v0 = vld [vmem:[%s623_s2 + $0x8] sm:$0xff] (!%p174_p3)  ;;  %v244_v1 = vld [vmem:[%s623_s2 + $0x18] sm:$0xff] (!%p174_p3)  ;;  %v241_v2 = vld [vmem:[%s623_s2] sm:$0xff] (!%p174_p3)  ;;  %p211_p4 = scmp.lt.s32.totalorder (!%p174_p3), %s530_s12, 1  ;;  %v540_v7 = vmov (!%p174_p3), 0.0   ;;  %vm249_vm0 = vcmask (!%p174_p3), 261120   ;;  %v334_v14 = vlaneseq (!%p174_p3) }
   0x7   : > { %177 = sbr.rel (%p174_p3) target bundleno = 245 (0xf5), region = 32  ;;  %v479_v3 = vpack.c.bf16 (!%p174_p3), %v244_v1, %v242_v0  ;;  %v243_v4 = vld [vmem:[%s623_s2 + $0x10] sm:$0xff] (!%p174_p3)  ;;  %v246_v5 = vld [vmem:[%s623_s2 + $0x28] sm:$0xff] (!%p174_p3)  ;;  %v248_v6 = vld [vmem:[%s623_s2 + $0x38] sm:$0xff] (!%p174_p3)  ;;  %317 = vmatprep.mubr.f32.mxu0 (!%p174_p3), %v540_v7 }
   0x8   : > { %v481_v8 = vpack.c.bf16 (!%p174_p3), %v243_v4, %v241_v2  ;;  %v483_v9 = vpack.c.bf16 (!%p174_p3), %v248_v6, %v246_v5  ;;  %v245_v10 = vld [vmem:[%s623_s2 + $0x20] sm:$0xff] (!%p174_p3)  ;;  %v247_v11 = vld [vmem:[%s623_s2 + $0x30] sm:$0xff] (!%p174_p3)  ;;  %v335_v15 = vshrl.u32 (!%p174_p3), %v334_v14, 7 }
   0x9   : > { %480 = vmatprep.subr.bf16.mxu0 (!%p174_p3), %v479_v3  ;;  %v485_v12 = vpack.c.bf16 (!%p174_p3), %v247_v11, %v245_v10 }
   0xa   : > { %482 = vmatpush1.bf16.msra.mxu0 (!%p174_p3), %v481_v8  ;;  %v336_v16 = vsub.s32 (!%p174_p3), 0, %v335_v15  ;;  %v340_v18 = vsub.s32 (!%p174_p3), 1, %v335_v15 }
   0xb   : > { %484 = vmatprep.subr.bf16.mxu0 (!%p174_p3), %v483_v9 }
   0xe   : > { %s630_s12 = smov (!%p211_p4, %s530_s12), 1  ;;  %486 = vmatpush1.bf16.msra.mxu0 %v485_v12 }
   0xf   : > { %s471_s5 = sshll.u32 %s630_s12, 3  ;;  %s472_s9 = sshll.u32 %s630_s12, 1 }
  0x10   : > { %s217_s8 = scalar_lea.vmem %s621_s0, %s471_s5  ;;  %s221_s16 = scalar_lea.vmem %s622_s1, %s472_s9 }
  0x11   : > { %v240_v13 = vld [vmem:[%s217_s8] sm:$0xff]  ;;  %s478_s17 = sshll.u32 %s630_s12, 4 }
  0x12   : > { %475 = vmatmul.mubr.msk.f32.vlgmr.msra.gmra.mrb[0].mxu0 %vm249_vm0, %v240_v13  ;;  %v330_v17 = vld [vmem:[%s221_s16] sm:$0x3]  ;;  %s234_s20 = scalar_lea.vmem %s624_s3, %s478_s17 }
  0x13   : > { %v337_v19 = vrot.slane %v330_v17, %v336_v16  ;;  %v341_v20 = vrot.slane %v330_v17, %v340_v18 }
  0xe5   : > { %v319_v21 = vpop.f32.mrb[0].mxu0 }
  0xe6   : > { %v344_v22 = vadd.f32 %v337_v19, %v319_v21  ;;  %v321_v23 = vpop.f32.mrb[1].mxu0 }
  0xe7   : > { %v345_v24 = vadd.f32 %v341_v20, %v321_v23 }
  0xe8   : > { %512 = vtanh.f32 %v344_v22 }
  0xe9   : > { %514 = vtanh.f32 %v345_v24 }
  0xf2   : > { %v513_v25 = vpop.eup %512 }
  0xf3   : > { %v515_v26 = vpop.eup %514  ;;  %348 = vst [vmem:[%s234_s20] sm:$0xff] %v513_v25 }
  0xf4   : > { %349 = vst [vmem:[%s234_s20 + $0x8] sm:$0xff] %v515_v26 }
  0xf5 PF: > { %s13_s14 = sadd.s32 1, %s538_s14   ;;  %s625_s12 = smov %s534_s13 }
  0xf6   : > { %p10_p5 = scmp.ge.s32.totalorder %s13_s14, 4   ;;  %s626_s13 = smov %s628_s15 }
  0xf8   :  { %12 = sbr.rel (!%p10_p5) target bundleno = 2 (0x2), region = 70 }

</bundles_post_ra>
